<compile_context>
chip_gen: v7x
topology: tpu7x:2x2x1
jax: 0.10.0
libtpu: 0.0.40
codegen_flags: <defaults>
</compile_context>

<pallas_src>
import functools
import math

import jax
import jax.numpy as jnp
from jax.experimental import pallas as pl
from jax.experimental.pallas import tpu as pltpu


def _round_up(x, m):
    return ((x + m - 1) // m) * m


def _linvar_kernel(x_ref, mu_w_ref, rho_w_ref, eps_w_ref,
                   mu_b_ref, rho_b_ref, eps_b_ref,
                   out_ref, kl_ref,
                   *, log_sp, inv_denom, prior_mean):
    k = pl.program_id(1)
    nk = pl.num_programs(1)

    # ---- sample weight tile via reparameterization (stable softplus) ----
    rho_w = rho_w_ref[...]
    sigma_w = jnp.maximum(rho_w, 0.0) + jnp.log1p(jnp.exp(-jnp.abs(rho_w)))
    mu_w = mu_w_ref[...]
    w = mu_w + sigma_w * eps_w_ref[...]                       # (TK, TN)

    # ---- per-output-column KL partial for this weight tile ----
    dmu = mu_w - prior_mean
    kl_w = (log_sp - jnp.log(sigma_w)) \
        + (sigma_w * sigma_w + dmu * dmu) * inv_denom - 0.5
    kl_w_cols = jnp.sum(kl_w, axis=0, keepdims=True)          # (1, TN)

    # ---- bias sample / KL for this N tile (tiny, (1, TN)) ----
    rho_b = rho_b_ref[...]
    sigma_b = jnp.maximum(rho_b, 0.0) + jnp.log1p(jnp.exp(-jnp.abs(rho_b)))
    mu_b = mu_b_ref[...]

    @pl.when(k == 0)
    def _init():
        out_ref[...] = jnp.zeros_like(out_ref)
        dmu_b = mu_b - prior_mean
        kl_ref[...] = (log_sp - jnp.log(sigma_b)) \
            + (sigma_b * sigma_b + dmu_b * dmu_b) * inv_denom - 0.5

    kl_ref[...] += kl_w_cols
    out_ref[...] += jnp.dot(x_ref[...], w, preferred_element_type=jnp.float32)

    @pl.when(k == nk - 1)
    def _finish():
        b = mu_b + sigma_b * eps_b_ref[...]                   # (1, TN)
        out_ref[...] += b                                     # broadcast over batch rows


def linear_variational_forward(x, mu_w, rho_w, eps_w, mu_b, rho_b, eps_b,
                               prior_mean, prior_variance):
    batch, in_features = x.shape
    out_features = mu_w.shape[0]

    prior_mean = float(prior_mean)
    prior_variance = float(prior_variance)

    # Tile sizes (multiples of 128 on both K and N so every BlockSpec is (8,128)-aligned;
    # 512-wide tiles keep DMA near HBM roofline while fitting every generation's scoped VMEM).
    TN = min(512, _round_up(out_features, 128))
    TK = min(512, _round_up(in_features, 128))
    Np = _round_up(out_features, TN)
    Kp = _round_up(in_features, TK)
    Bp = _round_up(batch, 8)

    # Padding values chosen so padded elements contribute exactly zero KL:
    #   mu_pad = prior_mean, sigma_pad = prior_variance  =>  rho_pad = softplus^-1(prior_variance)
    rho_pad = prior_variance + math.log(-math.expm1(-prior_variance))

    def pad_to(a, shape, value):
        return jnp.pad(a, [(0, t - s) for s, t in zip(a.shape, shape)],
                       constant_values=value)

    # Pre-transpose weights to [K, N] (lane-dense output / canonical MXU shape), then pad.
    x_p = pad_to(x.astype(jnp.float32), (Bp, Kp), 0.0)
    mu_wt = pad_to(mu_w.T.astype(jnp.float32), (Kp, Np), prior_mean)
    rho_wt = pad_to(rho_w.T.astype(jnp.float32), (Kp, Np), rho_pad)
    eps_wt = pad_to(eps_w.T.astype(jnp.float32), (Kp, Np), 0.0)
    mu_bp = pad_to(mu_b.reshape(1, -1).astype(jnp.float32), (1, Np), prior_mean)
    rho_bp = pad_to(rho_b.reshape(1, -1).astype(jnp.float32), (1, Np), rho_pad)
    eps_bp = pad_to(eps_b.reshape(1, -1).astype(jnp.float32), (1, Np), 0.0)

    kernel = functools.partial(
        _linvar_kernel,
        log_sp=math.log(prior_variance),
        inv_denom=1.0 / (2.0 * prior_variance * prior_variance),
        prior_mean=prior_mean,
    )

    grid = (Np // TN, Kp // TK)

    n_w_elems = Kp * Np
    cost = pl.CostEstimate(
        flops=int(2 * Bp * Kp * Np + 10 * (n_w_elems + Np)),
        transcendentals=int(3 * (n_w_elems + Np)),
        bytes_accessed=int(4 * (Bp * Kp + 3 * n_w_elems + 3 * Np + Bp * Np + Np)),
    )

    out_p, kl_cols = pl.pallas_call(
        kernel,
        grid=grid,
        in_specs=[
            pl.BlockSpec((Bp, TK), lambda n, k: (0, k)),      # x
            pl.BlockSpec((TK, TN), lambda n, k: (k, n)),      # mu_w^T
            pl.BlockSpec((TK, TN), lambda n, k: (k, n)),      # rho_w^T
            pl.BlockSpec((TK, TN), lambda n, k: (k, n)),      # eps_w^T
            pl.BlockSpec((1, TN), lambda n, k: (0, n)),       # mu_b
            pl.BlockSpec((1, TN), lambda n, k: (0, n)),       # rho_b
            pl.BlockSpec((1, TN), lambda n, k: (0, n)),       # eps_b
        ],
        out_specs=(
            pl.BlockSpec((Bp, TN), lambda n, k: (0, n)),      # out (resident across K)
            pl.BlockSpec((1, TN), lambda n, k: (0, n)),       # per-column KL partials
        ),
        out_shape=(
            jax.ShapeDtypeStruct((Bp, Np), jnp.float32),
            jax.ShapeDtypeStruct((1, Np), jnp.float32),
        ),
        compiler_params=pltpu.CompilerParams(
            dimension_semantics=("parallel", "arbitrary"),
            vmem_limit_bytes=32 * 1024 * 1024,
        ),
        cost_estimate=cost,
    )(x_p, mu_wt, rho_wt, eps_wt, mu_bp, rho_bp, eps_bp)

    out = out_p[:batch, :out_features]
    kl = jnp.sum(kl_cols[:, :out_features])
    return out, kl


if __name__ == "__main__":
    # Module hyperparameters (mirrors LinearVariational.__init__).
    prior_mean = 0.0
    prior_variance = 1.0
    posterior_rho_init = -3.0
    in_features = 32
    out_features = 16
    batch = 8

    key = jax.random.PRNGKey(0)
    k_x, k_muw, k_rhow, k_mub, k_rhob, k_epsw, k_epsb = jax.random.split(key, 7)

    # Parameter init matching init_parameters(): mu ~ N(0, 0.1), rho ~ N(rho_init, 0.1).
    mu_w = 0.1 * jax.random.normal(k_muw, (out_features, in_features), jnp.float32)
    rho_w = posterior_rho_init + 0.1 * jax.random.normal(
        k_rhow, (out_features, in_features), jnp.float32)
    mu_b = 0.1 * jax.random.normal(k_mub, (out_features,), jnp.float32)
    rho_b = posterior_rho_init + 0.1 * jax.random.normal(
        k_rhob, (out_features,), jnp.float32)

    # Fresh standard-normal noise per forward (eps_weight.normal_() / eps_bias.normal_()).
    eps_w = jax.random.normal(k_epsw, (out_features, in_features), jnp.float32)
    eps_b = jax.random.normal(k_epsb, (out_features,), jnp.float32)

    x = jax.random.normal(k_x, (batch, in_features), jnp.float32)

    out, kl = linear_variational_forward(
        x, mu_w, rho_w, eps_w, mu_b, rho_b, eps_b, prior_mean, prior_variance)
    jax.block_until_ready((out, kl))

    # Pure-JAX reference check.
    sigma_w = jnp.log1p(jnp.exp(rho_w))
    sigma_b = jnp.log1p(jnp.exp(rho_b))
    w_ref = mu_w + sigma_w * eps_w
    b_ref = mu_b + sigma_b * eps_b
    out_ref = x @ w_ref.T + b_ref

    def kl_div(mu_q, sigma_q):
        sp = prior_variance
        return jnp.sum(jnp.log(sp) - jnp.log(sigma_q)
                       + (sigma_q ** 2 + (mu_q - prior_mean) ** 2) / (2 * sp ** 2) - 0.5)

    kl_ref = kl_div(mu_w, sigma_w) + kl_div(mu_b, sigma_b)

    assert out.shape == (batch, out_features)
    assert jnp.allclose(out, out_ref, atol=1e-4, rtol=1e-4), (
        jnp.max(jnp.abs(out - out_ref)))
    assert jnp.allclose(kl, kl_ref, atol=1e-3, rtol=1e-4), (kl, kl_ref)

    print("KERNEL_OK")
</pallas_src>

<mosaic_0001>
module attributes {stable_mosaic.version = 11 : i64} {
  func.func @_linvar_kernel(%arg0: i32, %arg1: i32, %arg2: memref<8x128xf32, #tpu.memory_space<vmem>>, %arg3: memref<128x128xf32, #tpu.memory_space<vmem>>, %arg4: memref<128x128xf32, #tpu.memory_space<vmem>>, %arg5: memref<128x128xf32, #tpu.memory_space<vmem>>, %arg6: memref<1x128xf32, #tpu.memory_space<vmem>>, %arg7: memref<1x128xf32, #tpu.memory_space<vmem>>, %arg8: memref<1x128xf32, #tpu.memory_space<vmem>>, %arg9: memref<8x128xf32, #tpu.memory_space<vmem>>, %arg10: memref<1x128xf32, #tpu.memory_space<vmem>>) attributes {dimension_semantics = [#tpu.dimension_semantics<parallel>, #tpu.dimension_semantics<arbitrary>], iteration_bounds = array<i64: 1, 1>, scalar_prefetch = 0 : i64, scratch_operands = 0 : i64, tpu.core_type = #tpu.core_type<tc>, window_params = [{transform_indices = @transform_0, window_bounds = array<i64: 8, 128>}, {transform_indices = @transform_1, window_bounds = array<i64: 128, 128>}, {transform_indices = @transform_2, window_bounds = array<i64: 128, 128>}, {transform_indices = @transform_3, window_bounds = array<i64: 128, 128>}, {transform_indices = @transform_4, window_bounds = array<i64: 1, 128>}, {transform_indices = @transform_5, window_bounds = array<i64: 1, 128>}, {transform_indices = @transform_6, window_bounds = array<i64: 1, 128>}, {transform_indices = @transform_7, window_bounds = array<i64: 8, 128>}, {transform_indices = @transform_8, window_bounds = array<i64: 1, 128>}]} {
    %c0 = arith.constant 0 : index
    %c0_0 = arith.constant 0 : index
    %0 = vector.load %arg4[%c0, %c0_0] : memref<128x128xf32, #tpu.memory_space<vmem>>, vector<128x128xf32>
    %cst = arith.constant 0.000000e+00 : f32
    %1 = vector.broadcast %cst : f32 to vector<128x128xf32>
    %2 = arith.maximumf %0, %1 : vector<128x128xf32>
    %3 = math.absf %0 : vector<128x128xf32>
    %cst_1 = arith.constant 0.000000e+00 : f32
    %4 = vector.broadcast %cst_1 : f32 to vector<128x128xf32>
    %5 = arith.subf %4, %3 : vector<128x128xf32>
    %6 = math.exp %5 : vector<128x128xf32>
    %7 = math.log1p %6 : vector<128x128xf32>
    %8 = arith.addf %2, %7 : vector<128x128xf32>
    %c0_2 = arith.constant 0 : index
    %c0_3 = arith.constant 0 : index
    %9 = vector.load %arg3[%c0_2, %c0_3] : memref<128x128xf32, #tpu.memory_space<vmem>>, vector<128x128xf32>
    %c0_4 = arith.constant 0 : index
    %c0_5 = arith.constant 0 : index
    %10 = vector.load %arg5[%c0_4, %c0_5] : memref<128x128xf32, #tpu.memory_space<vmem>>, vector<128x128xf32>
    %11 = arith.mulf %8, %10 : vector<128x128xf32>
    %12 = arith.addf %9, %11 : vector<128x128xf32>
    %cst_6 = arith.constant 0.000000e+00 : f32
    %13 = vector.broadcast %cst_6 : f32 to vector<128x128xf32>
    %14 = arith.subf %9, %13 : vector<128x128xf32>
    %15 = math.log %8 : vector<128x128xf32>
    %cst_7 = arith.constant 0.000000e+00 : f32
    %16 = vector.broadcast %cst_7 : f32 to vector<128x128xf32>
    %17 = arith.subf %16, %15 : vector<128x128xf32>
    %18 = arith.mulf %8, %8 : vector<128x128xf32>
    %19 = arith.mulf %14, %14 : vector<128x128xf32>
    %20 = arith.addf %18, %19 : vector<128x128xf32>
    %cst_8 = arith.constant 5.000000e-01 : f32
    %21 = vector.broadcast %cst_8 : f32 to vector<128x128xf32>
    %22 = arith.mulf %20, %21 : vector<128x128xf32>
    %23 = arith.addf %17, %22 : vector<128x128xf32>
    %cst_9 = arith.constant 5.000000e-01 : f32
    %24 = vector.broadcast %cst_9 : f32 to vector<128x128xf32>
    %25 = arith.subf %23, %24 : vector<128x128xf32>
    %cst_10 = arith.constant dense<0.000000e+00> : vector<128xf32>
    %26 = vector.multi_reduction <add>, %25, %cst_10 [0] : vector<128x128xf32> to vector<128xf32>
    %27 = vector.shape_cast %26 : vector<128xf32> to vector<1x128xf32>
    %c0_11 = arith.constant 0 : index
    %c0_12 = arith.constant 0 : index
    %28 = vector.load %arg7[%c0_11, %c0_12] : memref<1x128xf32, #tpu.memory_space<vmem>>, vector<1x128xf32>
    %cst_13 = arith.constant 0.000000e+00 : f32
    %29 = vector.broadcast %cst_13 : f32 to vector<1x128xf32>
    %30 = arith.maximumf %28, %29 : vector<1x128xf32>
    %31 = math.absf %28 : vector<1x128xf32>
    %cst_14 = arith.constant 0.000000e+00 : f32
    %32 = vector.broadcast %cst_14 : f32 to vector<1x128xf32>
    %33 = arith.subf %32, %31 : vector<1x128xf32>
    %34 = math.exp %33 : vector<1x128xf32>
    %35 = math.log1p %34 : vector<1x128xf32>
    %36 = arith.addf %30, %35 : vector<1x128xf32>
    %c0_15 = arith.constant 0 : index
    %c0_16 = arith.constant 0 : index
    %37 = vector.load %arg6[%c0_15, %c0_16] : memref<1x128xf32, #tpu.memory_space<vmem>>, vector<1x128xf32>
    %c0_i32 = arith.constant 0 : i32
    %38 = arith.cmpi eq, %arg1, %c0_i32 : i32
    %39 = arith.extui %38 : i1 to i32
    %c0_i32_17 = arith.constant 0 : i32
    %40 = arith.cmpi ne, %39, %c0_i32_17 : i32
    scf.if %40 {
      %cst_31 = arith.constant 0.000000e+00 : f32
      %52 = vector.broadcast %cst_31 : f32 to vector<8x128xf32>
      %c0_32 = arith.constant 0 : index
      %c0_33 = arith.constant 0 : index
      %53 = vector.load %arg9[%c0_32, %c0_33] : memref<8x128xf32, #tpu.memory_space<vmem>>, vector<8x128xf32>
      tpu.vector_store %arg9[%c0_32, %c0_33], %52 {strides = array<i32>} : memref<8x128xf32, #tpu.memory_space<vmem>>, vector<8x128xf32>,
      %cst_34 = arith.constant 0.000000e+00 : f32
      %54 = vector.broadcast %cst_34 : f32 to vector<1x128xf32>
      %55 = arith.subf %37, %54 : vector<1x128xf32>
      %56 = math.log %36 : vector<1x128xf32>
      %cst_35 = arith.constant 0.000000e+00 : f32
      %57 = vector.broadcast %cst_35 : f32 to vector<1x128xf32>
      %58 = arith.subf %57, %56 : vector<1x128xf32>
      %59 = arith.mulf %36, %36 : vector<1x128xf32>
      %60 = arith.mulf %55, %55 : vector<1x128xf32>
      %61 = arith.addf %59, %60 : vector<1x128xf32>
      %cst_36 = arith.constant 5.000000e-01 : f32
      %62 = vector.broadcast %cst_36 : f32 to vector<1x128xf32>
      %63 = arith.mulf %61, %62 : vector<1x128xf32>
      %64 = arith.addf %58, %63 : vector<1x128xf32>
      %cst_37 = arith.constant 5.000000e-01 : f32
      %65 = vector.broadcast %cst_37 : f32 to vector<1x128xf32>
      %66 = arith.subf %64, %65 : vector<1x128xf32>
      %c0_38 = arith.constant 0 : index
      %c0_39 = arith.constant 0 : index
      %67 = vector.load %arg10[%c0_38, %c0_39] : memref<1x128xf32, #tpu.memory_space<vmem>>, vector<1x128xf32>
      tpu.vector_store %arg10[%c0_38, %c0_39], %66 {strides = array<i32>} : memref<1x128xf32, #tpu.memory_space<vmem>>, vector<1x128xf32>,
    } else {
    }
    %c0_18 = arith.constant 0 : index
    %c0_19 = arith.constant 0 : index
    %41 = vector.load %arg10[%c0_18, %c0_19] : memref<1x128xf32, #tpu.memory_space<vmem>>, vector<1x128xf32>
    %42 = arith.addf %41, %27 : vector<1x128xf32>
    %c0_20 = arith.constant 0 : index
    %c0_21 = arith.constant 0 : index
    %43 = vector.load %arg10[%c0_20, %c0_21] : memref<1x128xf32, #tpu.memory_space<vmem>>, vector<1x128xf32>
    tpu.vector_store %arg10[%c0_20, %c0_21], %42 {strides = array<i32>} : memref<1x128xf32, #tpu.memory_space<vmem>>, vector<1x128xf32>,
    %c0_22 = arith.constant 0 : index
    %c0_23 = arith.constant 0 : index
    %44 = vector.load %arg9[%c0_22, %c0_23] : memref<8x128xf32, #tpu.memory_space<vmem>>, vector<8x128xf32>
    %c0_24 = arith.constant 0 : index
    %c0_25 = arith.constant 0 : index
    %45 = vector.load %arg2[%c0_24, %c0_25] : memref<8x128xf32, #tpu.memory_space<vmem>>, vector<8x128xf32>
    %cst_26 = arith.constant dense<0.000000e+00> : vector<8x128xf32>
    %46 = tpu.matmul %45, %12, %cst_26 {dimension_numbers = #tpu.dot_dimension_numbers<[1], [0], [0], [1], [0, 0, 1, 1], [], []>} : vector<8x128xf32>, vector<128x128xf32>, vector<8x128xf32> -> vector<8x128xf32>
    %47 = arith.addf %44, %46 : vector<8x128xf32>
    %c0_27 = arith.constant 0 : index
    %c0_28 = arith.constant 0 : index
    %48 = vector.load %arg9[%c0_27, %c0_28] : memref<8x128xf32, #tpu.memory_space<vmem>>, vector<8x128xf32>
    tpu.vector_store %arg9[%c0_27, %c0_28], %47 {strides = array<i32>} : memref<8x128xf32, #tpu.memory_space<vmem>>, vector<8x128xf32>,
    %c0_i32_29 = arith.constant 0 : i32
    %49 = arith.cmpi eq, %arg1, %c0_i32_29 : i32
    %50 = arith.extui %49 : i1 to i32
    %c0_i32_30 = arith.constant 0 : i32
    %51 = arith.cmpi ne, %50, %c0_i32_30 : i32
    scf.if %51 {
      %c0_31 = arith.constant 0 : index
      %c0_32 = arith.constant 0 : index
      %52 = vector.load %arg8[%c0_31, %c0_32] : memref<1x128xf32, #tpu.memory_space<vmem>>, vector<1x128xf32>
      %53 = arith.mulf %36, %52 : vector<1x128xf32>
      %54 = arith.addf %37, %53 : vector<1x128xf32>
      %c0_33 = arith.constant 0 : index
      %c0_34 = arith.constant 0 : index
      %55 = vector.load %arg9[%c0_33, %c0_34] : memref<8x128xf32, #tpu.memory_space<vmem>>, vector<8x128xf32>
      %56 = vector.broadcast %54 : vector<1x128xf32> to vector<8x128xf32>
      %57 = arith.addf %55, %56 : vector<8x128xf32>
      %c0_35 = arith.constant 0 : index
      %c0_36 = arith.constant 0 : index
      %58 = vector.load %arg9[%c0_35, %c0_36] : memref<8x128xf32, #tpu.memory_space<vmem>>, vector<8x128xf32>
      tpu.vector_store %arg9[%c0_35, %c0_36], %57 {strides = array<i32>} : memref<8x128xf32, #tpu.memory_space<vmem>>, vector<8x128xf32>,
    } else {
    }
    return
  }
  func.func @transform_0(%arg0: i32, %arg1: i32) -> (i32, i32) {
    %c0_i32 = arith.constant 0 : i32
    %c0_i32_0 = arith.constant 0 : i32
    return %c0_i32, %arg1 : i32, i32
  }
  func.func @transform_1(%arg0: i32, %arg1: i32) -> (i32, i32) {
    %c0_i32 = arith.constant 0 : i32
    return %arg1, %arg0 : i32, i32
  }
  func.func @transform_2(%arg0: i32, %arg1: i32) -> (i32, i32) {
    %c0_i32 = arith.constant 0 : i32
    return %arg1, %arg0 : i32, i32
  }
  func.func @transform_3(%arg0: i32, %arg1: i32) -> (i32, i32) {
    %c0_i32 = arith.constant 0 : i32
    return %arg1, %arg0 : i32, i32
  }
  func.func @transform_4(%arg0: i32, %arg1: i32) -> (i32, i32) {
    %c0_i32 = arith.constant 0 : i32
    %c0_i32_0 = arith.constant 0 : i32
    return %c0_i32, %arg0 : i32, i32
  }
  func.func @transform_5(%arg0: i32, %arg1: i32) -> (i32, i32) {
    %c0_i32 = arith.constant 0 : i32
    %c0_i32_0 = arith.constant 0 : i32
    return %c0_i32, %arg0 : i32, i32
  }
  func.func @transform_6(%arg0: i32, %arg1: i32) -> (i32, i32) {
    %c0_i32 = arith.constant 0 : i32
    %c0_i32_0 = arith.constant 0 : i32
    return %c0_i32, %arg0 : i32, i32
  }
  func.func @transform_7(%arg0: i32, %arg1: i32) -> (i32, i32) {
    %c0_i32 = arith.constant 0 : i32
    %c0_i32_0 = arith.constant 0 : i32
    return %c0_i32, %arg0 : i32, i32
  }
  func.func @transform_8(%arg0: i32, %arg1: i32) -> (i32, i32) {
    %c0_i32 = arith.constant 0 : i32
    %c0_i32_0 = arith.constant 0 : i32
    return %c0_i32, %arg0 : i32, i32
  }
}

</mosaic_0001>

<bundles_post_ra>
// kernel: tpu_custom_call.1
= control target key start
LH: loop header
LB: loop body
LE: loop exit
PB: predicated region body
PF: predicated region fallthrough
CT: control target
= control target key end

     0   :  { %14 = vsyncpa [#allocation3], 0  ;;  %s1501_s0 = inlined_call_operand.hbm [shape: f32[8,128], index: 0, kind: input, shape index: {}]   ;;  %s1502_s1 = inlined_call_operand.hbm [shape: f32[128,128], index: 1, kind: input, shape index: {}]   ;;  %s1503_s2 = inlined_call_operand.hbm [shape: f32[128,128], index: 2, kind: input, shape index: {}]   ;;  %s1504_s3 = inlined_call_operand.hbm [shape: f32[128,128], index: 3, kind: input, shape index: {}]   ;;  %s1505_s4 = inlined_call_operand.vmem [shape: f32[1,128], index: 4, kind: input, shape index: {}]   ;;  %s1506_s5 = inlined_call_operand.vmem [shape: f32[1,128], index: 5, kind: input, shape index: {}]   ;;  %s1507_s6 = inlined_call_operand.vmem [shape: f32[1,128], index: 6, kind: input, shape index: {}]   ;;  %s1508_s7 = inlined_call_operand.hbm [shape: f32[8,128], index: 7, kind: output, shape index: {0}]   ;;  %s1509_s8 = inlined_call_operand.hbm [shape: f32[1,128], index: 8, kind: output, shape index: {1}]  }
   0x1   :  { %15 = vsyncpa [#allocation6], 0 }
   0x2   :  { %16 = vsyncpa [#allocation9], 0 }
   0x3   :  { %17 = vsyncpa [#allocation4], 0 }
   0x4   :  { %18 = vsyncpa [#allocation12], 0  ;;  %s1071_s27 = smov [#allocation5]   ;;  %s929_s9 = scalar_lea.hbm %s1502_s1, 2048 }
   0x5   :  { %s34_s28 = sshll.u32 %s1071_s27, 4  ;;  %p930_p0 = scmp.ne.s32.totalorder %s1502_s1, %s929_s9  ;;  %s35_s28 = int_to_ptr.vmem [resolvable:$true] %s34_s28 }
   0x6   :  { %p933_p1 = scmp.lt.u32.totalorder %s929_s9, %s1502_s1 }
   0x8   :  { %p935_p2 = pnand %p933_p1, %p930_p0 }
   0xa   :  { %938 = shalt.err (!%p935_p2)
}
   0xb   :  { %s939_s14 = scalar_lea.vmem %s35_s28, 2048  ;;  %p944_p4 = scmp.lt.s32.totalorder %s35_s28, %s35_s28 }
   0xc   :  { %p940_p3 = scmp.ne.s32.totalorder %s35_s28, %s939_s14  ;;  %p945_p5 = scmp.lt.s32.totalorder %s939_s14, %s939_s14 }
   0xe   :  { %p946_p6 = por %p945_p5, %p944_p4 }
  0x10   :  { %p947_p7 = pnand %p946_p6, %p940_p3 }
  0x12   :  { %950 = shalt.err (!%p947_p7)
}
  0x13   :  { %s1072_s15 = smov 128   ;;  %s1073_s16 = smov 8  }
  0x14   :  { %40 = dma.hbm_to_vmem [thread:$0]  %s1502_s1, 2048, %s35_s28, [#allocation6], %s1072_s15, %s1072_s15, %s1073_s16  }
  0x15   :  { %s1074_s19 = smov [#allocation2]   ;;  %s1075_s21 = smov [#allocation7]  }
  0x16   :  { %s25_s20 = sshll.u32 %s1074_s19, 4  ;;  %s46_s22 = sshll.u32 %s1075_s21, 4  ;;  %s26_s20 = int_to_ptr.vmem [resolvable:$true] %s25_s20  ;;  %s47_s22 = int_to_ptr.vmem [resolvable:$true] %s46_s22 }
  0x17   :  { %s951_s25 = scalar_lea.hbm %s1501_s0, 128 }
  0x18   :  { %p952_p8 = scmp.ne.s32.totalorder %s1501_s0, %s951_s25  ;;  %p955_p9 = scmp.lt.u32.totalorder %s951_s25, %s1501_s0 }
  0x1a   :  { %p957_p10 = pnand %p955_p9, %p952_p8 }
  0x1c   :  { %960 = shalt.err (!%p957_p10)
}
  0x1d   :  { %s961_s1 = scalar_lea.vmem %s26_s20, 128  ;;  %p966_p12 = scmp.lt.s32.totalorder %s26_s20, %s26_s20 }
  0x1e   :  { %p962_p11 = scmp.ne.s32.totalorder %s26_s20, %s961_s1  ;;  %p967_p13 = scmp.lt.s32.totalorder %s961_s1, %s961_s1 }
  0x20   :  { %p968_p0 = por %p967_p13, %p966_p12 }
  0x22   :  { %p969_p1 = pnand %p968_p0, %p962_p11 }
  0x24   :  { %972 = shalt.err (!%p969_p1)
}
  0x25   :  { %28 = dma.hbm_to_vmem [thread:$0]  %s1501_s0, 128, %s26_s20, [#allocation3]  }
  0x26   :  { %s973_s12 = scalar_lea.hbm %s1503_s2, 2048 }
  0x27   :  { %p974_p2 = scmp.ne.s32.totalorder %s1503_s2, %s973_s12  ;;  %p977_p3 = scmp.lt.u32.totalorder %s973_s12, %s1503_s2 }
  0x29   :  { %p979_p4 = pnand %p977_p3, %p974_p2 }
  0x2b   :  { %982 = shalt.err (!%p979_p4)
}
  0x2c   :  { %s983_s19 = scalar_lea.vmem %s47_s22, 2048  ;;  %p988_p6 = scmp.lt.s32.totalorder %s47_s22, %s47_s22 }
  0x2d   :  { %p984_p5 = scmp.ne.s32.totalorder %s47_s22, %s983_s19  ;;  %p989_p7 = scmp.lt.s32.totalorder %s983_s19, %s983_s19 }
  0x2f   :  { %p990_p8 = por %p989_p7, %p988_p6 }
  0x31   :  { %p991_p9 = pnand %p990_p8, %p984_p5 }
  0x33   :  { %994 = shalt.err (!%p991_p9)
}
  0x34   :  { %52 = dma.hbm_to_vmem [thread:$0]  %s1503_s2, 2048, %s47_s22, [#allocation6], %s1072_s15, %s1072_s15, %s1073_s16  }
  0x35   :  { %s1076_s21 = smov [#allocation8]   ;;  %s995_s26 = scalar_lea.hbm %s1504_s3, 2048 }
  0x36   :  { %s58_s23 = sshll.u32 %s1076_s21, 4  ;;  %p996_p10 = scmp.ne.s32.totalorder %s1504_s3, %s995_s26  ;;  %s59_s23 = int_to_ptr.vmem [resolvable:$true] %s58_s23 }
  0x37   :  { %p999_p11 = scmp.lt.u32.totalorder %s995_s26, %s1504_s3 }
  0x39   :  { %p1001_p12 = pnand %p999_p11, %p996_p10 }
  0x3b   :  { %1004 = shalt.err (!%p1001_p12)
}
  0x3c   :  { %s1005_s28 = scalar_lea.vmem %s59_s23, 2048  ;;  %p1010_p0 = scmp.lt.s32.totalorder %s59_s23, %s59_s23 }
  0x3d   :  { %p1006_p13 = scmp.ne.s32.totalorder %s59_s23, %s1005_s28  ;;  %p1011_p1 = scmp.lt.s32.totalorder %s1005_s28, %s1005_s28 }
  0x3f   :  { %p1012_p2 = por %p1011_p1, %p1010_p0 }
  0x41   :  { %p1013_p3 = pnand %p1012_p2, %p1006_p13 }
  0x43   :  { %1016 = shalt.err (!%p1013_p3)
}
  0x44   :  { %64 = dma.hbm_to_vmem [thread:$0]  %s1504_s3, 2048, %s59_s23, [#allocation9], %s1072_s15, %s1072_s15, %s1073_s16  }
  0x45   :  { %1061 = dma.done.wait [#allocation3], 128  }
  0x46   :  { %1062 = vsyncadd [#allocation3], 4294967168 }
  0x47   :  { %1063 = dma.done.wait [#allocation6], 4096  }
  0x48   :  { %1064 = vsyncadd [#allocation6], 4294963200 }
  0x49   :  { %1065 = dma.done.wait [#allocation9], 2048  }
  0x4a   :  { %1066 = vsyncadd [#allocation9], 4294965248  ;;  %v1510_v0 = vmov 0.0|0.0   ;;  %vm1078_vm0 = vmmov 0   ;;  %v1079_v1 = vmov 0.0   ;;  %v1185_v2 = vld [vmem:[#allocation7] sm:$0xff] }
  0x4b   :  { %792 = vmatprep.subr.bf16.mxu0 %v1510_v0  ;;  %789 = vmatprep.mubr.msk.f32.mxu0 %vm1078_vm0, %v1079_v1  ;;  %v1187_v3 = vld [vmem:[#allocation7 + $0x8] sm:$0xff]  ;;  %v115_v4 = vand.u32 2147483647, %v1185_v2  ;;  %v1191_v8 = vld [vmem:[#allocation7 + $0x10] sm:$0xff]  ;;  %v1193_v9 = vld [vmem:[#allocation7 + $0x18] sm:$0xff]  ;;  %v99_v22 = vmax.f32 %v1185_v2, 0.0 }
  0x4c   :  { %v116_v5 = vand.u32 2147483647, %v1187_v3  ;;  %v117_v10 = vand.u32 2147483647, %v1191_v8  ;;  %v118_v11 = vand.u32 2147483647, %v1193_v9 }
  0x4d   :  { %v131_v6 = vsub.f32 0.0, %v115_v4  ;;  %v1197_v16 = vld [vmem:[#allocation7 + $0x20] sm:$0xff]  ;;  %v1199_v17 = vld [vmem:[#allocation7 + $0x28] sm:$0xff]  ;;  %v1204_v24 = vld [vmem:[#allocation7 + $0x30] sm:$0xff]  ;;  %v100_v25 = vmax.f32 %v1187_v3, 0.0 }
  0x4e   :  { %v132_v7 = vsub.f32 0.0, %v116_v5  ;;  %v133_v14 = vsub.f32 0.0, %v117_v10  ;;  %v134_v15 = vsub.f32 0.0, %v118_v11  ;;  %v119_v18 = vand.u32 2147483647, %v1197_v16  ;;  %v1207_v26 = vld [vmem:[#allocation5] sm:$0xff] }
  0x4f   :  { %v147_v12 = vmul.f32 1.442695, %v131_v6  ;;  %v120_v21 = vand.u32 2147483647, %v1199_v17  ;;  %v1209_v28 = vld [vmem:[#allocation7 + $0x38] sm:$0xff]  ;;  %v1212_v30 = vld [vmem:[#allocation5 + $0x8] sm:$0xff]  ;;  %v1216_v31 = vmul.f32 %v1207_v26, %v1207_v26 }
  0x50   :  { %v149_v13 = vmul.f32 1.442695, %v132_v7  ;;  %v151_v19 = vmul.f32 1.442695, %v133_v14  ;;  %v153_v20 = vmul.f32 1.442695, %v134_v15  ;;  %v1221_v34 = vmul.f32 %v1212_v30, %v1212_v30 }
  0x51   :  { %827 = vpow2.f32 %v147_v12  ;;  %v135_v23 = vsub.f32 0.0, %v119_v18  ;;  %v136_v27 = vsub.f32 0.0, %v120_v21  ;;  %v121_v29 = vand.u32 2147483647, %v1204_v24  ;;  %v1224_v38 = vld [vmem:[#allocation7 + $0x40] sm:$0xff]  ;;  %v1227_v40 = vld [vmem:[#allocation5 + $0x10] sm:$0xff] }
  0x52   :  { %829 = vpow2.f32 %v149_v13  ;;  %v122_v33 = vand.u32 2147483647, %v1209_v28  ;;  %v1229_v42 = vld [vmem:[#allocation7 + $0x48] sm:$0xff]  ;;  %v123_v43 = vand.u32 2147483647, %v1224_v38  ;;  %v1232_v44 = vld [vmem:[#allocation5 + $0x18] sm:$0xff]  ;;  %v1236_v45 = vmul.f32 %v1227_v40, %v1227_v40 }
  0x53   :  { %831 = vpow2.f32 %v151_v19  ;;  %v155_v32 = vmul.f32 1.442695, %v135_v23  ;;  %v157_v36 = vmul.f32 1.442695, %v136_v27  ;;  %v137_v37 = vsub.f32 0.0, %v121_v29  ;;  %v1244_v50 = vld [vmem:[#allocation5 + $0x20] sm:$0xff] }
  0x54   :  { %833 = vpow2.f32 %v153_v20  ;;  %v138_v41 = vsub.f32 0.0, %v122_v33  ;;  %v124_v47 = vand.u32 2147483647, %v1229_v42  ;;  %v1241_v48 = vmul.f32 %v1232_v44, %v1232_v44  ;;  %v1246_v51 = vld [vmem:[#allocation5 + $0x28] sm:$0xff]  ;;  %v1259_v60 = vld [vmem:[#allocation5 + $0x30] sm:$0xff]  ;;  %v1267_v12 = vld [vmem:[#allocation5 + $0x38] sm:$0xff] }
  0x55   :  { %835 = vpow2.f32 %v155_v32  ;;  %v159_v46 = vmul.f32 1.442695, %v137_v37  ;;  %v139_v53 = vsub.f32 0.0, %v123_v43  ;;  %v1251_v55 = vmul.f32 %v1244_v50, %v1244_v50  ;;  %v1265_v6 = vld [vmem:[#allocation7 + $0x50] sm:$0xff]  ;;  %v1269_v13 = vld [vmem:[#allocation7 + $0x58] sm:$0xff] }
  0x56   :  { %837 = vpow2.f32 %v157_v36  ;;  %v161_v52 = vmul.f32 1.442695, %v138_v41  ;;  %v1255_v56 = vmul.f32 %v1246_v51, %v1246_v51  ;;  %v1263_v4 = vmul.f32 %v1259_v60, %v1259_v60 }
  0x57   :  { %839 = vpow2.f32 %v159_v46  ;;  %v163_v61 = vmul.f32 1.442695, %v139_v53  ;;  %v140_v5 = vsub.f32 0.0, %v124_v47  ;;  %v1273_v19 = vmul.f32 %v1267_v12, %v1267_v12 }
  0x58   :  { %841 = vpow2.f32 %v161_v52 }
  0x59   :  { %843 = vpow2.f32 %v163_v61  ;;  %v165_v33 = vmul.f32 1.442695, %v140_v5 }
  0x5b   :  { %v828_v57 = vpop.eup %827 }
  0x5c   :  { %v830_v62 = vpop.eup %829  ;;  %v179_v63 = vadd.f32 1.0, %v828_v57  ;;  %v182_v1 = vmul.f32 -0.5, %v828_v57  ;;  %v185_v7 = vand.u32 2147483647, %v828_v57 }
  0x5d   :  { %v188_v10 = vadd.f32 1.0, %v830_v62  ;;  %v191_v11 = vmul.f32 -0.5, %v830_v62  ;;  %v832_v14 = vpop.eup %831  ;;  %v194_v18 = vand.u32 2147483647, %v830_v62 }
  0x5e   :  { %845 = vlog2.f32 %v179_v63  ;;  %v183_v15 = vadd.f32 1.0, %v182_v1  ;;  %v834_v20 = vpop.eup %833  ;;  %v197_v21 = vadd.f32 1.0, %v832_v14  ;;  %v200_v29 = vmul.f32 -0.5, %v832_v14 }
  0x5f   :  { %847 = vlog2.f32 %v188_v10  ;;  %v206_v32 = vadd.f32 1.0, %v834_v20  ;;  %v836_v37 = vpop.eup %835  ;;  %vm1278_vm1 = vcmp.lt.f32.partialorder %v185_v7, 0.0004427343  ;;  %v192_v43 = vadd.f32 1.0, %v191_v11 }
  0x60   :  { %849 = vlog2.f32 %v197_v21  ;;  %v209_v46 = vmul.f32 -0.5, %v834_v20  ;;  %v838_v47 = vpop.eup %837  ;;  %v184_v52 = vmul.f32 %v828_v57, %v183_v15  ;;  %vm1282_vm2 = vcmp.lt.f32.partialorder %v194_v18, 0.0004427343 }
  0x61   :  { %851 = vlog2.f32 %v206_v32  ;;  %v215_v61 = vadd.f32 1.0, %v836_v37  ;;  %v201_v63 = vadd.f32 1.0, %v200_v29  ;;  %v203_v1 = vand.u32 2147483647, %v832_v14  ;;  %v840_v36 = vpop.eup %839 }
  0x62   :  { %v212_v5 = vand.u32 2147483647, %v834_v20  ;;  %v218_v10 = vmul.f32 -0.5, %v836_v37  ;;  %v210_v7 = vadd.f32 1.0, %v209_v46  ;;  %v224_v23 = vadd.f32 1.0, %v838_v47  ;;  %v842_v11 = vpop.eup %841 }
  0x63   :  { %853 = vlog2.f32 %v215_v61  ;;  %v227_v27 = vmul.f32 -0.5, %v838_v47  ;;  %v193_v21 = vmul.f32 %v830_v62, %v192_v43  ;;  %v221_v58 = vand.u32 2147483647, %v836_v37  ;;  %v1286_v32 = vpop.eup %843 }
  0x64   :  { %v219_v59 = vadd.f32 1.0, %v218_v10  ;;  %v230_v57 = vand.u32 2147483647, %v838_v47  ;;  %855 = vlog2.f32 %v224_v23  ;;  %v233_v18 = vadd.f32 1.0, %v840_v36 }
  0x65   :  { %v228_v15 = vadd.f32 1.0, %v227_v27  ;;  %v236_v54 = vmul.f32 -0.5, %v840_v36  ;;  %v202_v29 = vmul.f32 %v832_v14, %v201_v63  ;;  %vm1288_vm3 = vcmp.lt.f32.partialorder %v203_v1, 0.0004427343 }
  0x66   :  { %vm1292_vm4 = vcmp.lt.f32.partialorder %v212_v5, 0.0004427343  ;;  %v242_v61 = vadd.f32 1.0, %v842_v11  ;;  %v211_v43 = vmul.f32 %v834_v20, %v210_v7  ;;  %857 = vlog2.f32 %v233_v18 }
  0x67   :  { %v237_v10 = vadd.f32 1.0, %v236_v54  ;;  %v245_v23 = vmul.f32 -0.5, %v842_v11  ;;  %v1296_v39 = vmul.f32 %v836_v37, %v219_v59  ;;  %vm1298_vm5 = vcmp.lt.f32.partialorder %v221_v58, 0.0004427343  ;;  %v355_v37 = vld [vmem:[#allocation8] sm:$0xff] }
  0x68   :  { %v846_v62 = vpop.eup %845  ;;  %v239_v63 = vand.u32 2147483647, %v840_v36  ;;  %859 = vlog2.f32 %v242_v61  ;;  %v1302_v5 = vmul.f32 %v838_v47, %v228_v15  ;;  %vm1304_vm6 = vcmp.lt.f32.partialorder %v230_v57, 0.0004427343  ;;  %v356_v15 = vld [vmem:[#allocation8 + $0x8] sm:$0xff] }
  0x69   :  { %v848_v27 = vpop.eup %847  ;;  %v181_v49 = vmul.f32 0.6931472, %v846_v62  ;;  %v246_v20 = vadd.f32 1.0, %v245_v23  ;;  %v248_v54 = vand.u32 2147483647, %v842_v11  ;;  %v1310_v58 = vmul.f32 %v840_v36, %v237_v10 }
  0x6a   :  { %v190_v1 = vmul.f32 0.6931472, %v848_v27  ;;  %v850_v7 = vpop.eup %849  ;;  %861 = vpow2.f32 %v165_v33  ;;  %v251_v18 = vadd.f32 1.0, %v1286_v32  ;;  %v254_v23 = vmul.f32 -0.5, %v1286_v32 }
  0x6b   :  { %v187_v59 = vsel %vm1278_vm1, %v184_v52, %v181_v49  ;;  %v852_v61 = vpop.eup %851  ;;  %v199_v62 = vmul.f32 0.6931472, %v850_v7  ;;  %v1320_v36 = vmul.f32 %v842_v11, %v246_v20  ;;  %vm1324_vm7 = vcmp.lt.f32.partialorder %v239_v63, 0.0004427343  ;;  %v358_v11 = vld [vmem:[#allocation8 + $0x18] sm:$0xff] }
  0x6c   :  { %v196_v47 = vsel %vm1282_vm2, %v193_v21, %v190_v1  ;;  %v323_v57 = vadd.f32 %v187_v59, %v99_v22  ;;  %v208_v41 = vmul.f32 0.6931472, %v852_v61  ;;  %863 = vlog2.f32 %v251_v18 }
  0x6d   :  { %v324_v49 = vadd.f32 %v196_v47, %v100_v25  ;;  %v854_v33 = vpop.eup %853  ;;  %v205_v53 = vsel %vm1288_vm3, %v202_v29, %v199_v62  ;;  %v357_v25 = vld [vmem:[#allocation8 + $0x10] sm:$0xff]  ;;  %vm1330_vm8 = vcmp.lt.f32.partialorder %v248_v54, 0.0004427343  ;;  %v1528_v63 = vmax.f32 %v1191_v8, 0.0 }
  0x6e   :  { %v371_v52 = vmul.f32 %v355_v37, %v323_v57  ;;  %865 = vlog2.f32 %v323_v57  ;;  %v451_v10 = vmul.f32 %v323_v57, %v323_v57  ;;  %v214_v3 = vsel %vm1292_vm4, %v211_v43, %v208_v41  ;;  %v856_v1 = vpop.eup %855 }
  0x6f   :  { %v372_v22 = vmul.f32 %v356_v15, %v324_v49  ;;  %867 = vlog2.f32 %v324_v49  ;;  %v452_v21 = vmul.f32 %v324_v49, %v324_v49  ;;  %v325_v20 = vadd.f32 %v205_v53, %v1528_v63  ;;  %v359_v49 = vld [vmem:[#allocation8 + $0x20] sm:$0xff] }
  0x70   :  { %v387_v0 = vadd.f32 %v371_v52, %v1207_v26  ;;  %v483_v29 = vadd.f32 %v1216_v31, %v451_v10  ;;  %v1529_v7 = vmax.f32 %v1193_v9, 0.0  ;;  %v217_v37 = vmul.f32 0.6931472, %v854_v33  ;;  %v858_v18 = vpop.eup %857  ;;  %v360_v10 = vld [vmem:[#allocation8 + $0x28] sm:$0xff] }
  0x71   :  { %v388_v46 = vadd.f32 %v372_v22, %v1212_v30  ;;  %v484_v43 = vadd.f32 %v1221_v34, %v452_v21  ;;  %v226_v54 = vmul.f32 0.6931472, %v856_v1  ;;  %v373_v61 = vmul.f32 %v357_v25, %v325_v20 }
  0x72   :  { %v326_v59 = vadd.f32 %v214_v3, %v1529_v7  ;;  %869 = vlog2.f32 %v325_v20  ;;  %v1342_v57 = vadd.f32 1.0, %v254_v23  ;;  %v860_v26 = vpop.eup %859  ;;  %v499_v31 = vmul.f32 0.5, %v483_v29 }
  0x73   :  { %v793_v15 = vpack.c.bf16 %v388_v46, %v387_v0  ;;  %v453_v8 = vmul.f32 %v325_v20, %v325_v20  ;;  %v389_v9 = vadd.f32 %v373_v61, %v1227_v40  ;;  %v223_v34 = vsel %vm1298_vm5, %v1296_v39, %v217_v37  ;;  %v361_v37 = vld [vmem:[#allocation8 + $0x30] sm:$0xff] }
  0x74   :  { %v374_v47 = vmul.f32 %v358_v11, %v326_v59  ;;  %871 = vlog2.f32 %v326_v59  ;;  %v454_v30 = vmul.f32 %v326_v59, %v326_v59  ;;  %v1349_v41 = vpop.eup %861  ;;  %v232_v33 = vsel %vm1304_vm6, %v1302_v5, %v226_v54  ;;  %v362_v54 = vld [vmem:[#allocation8 + $0x38] sm:$0xff] }
  0x75   :  { %794 = vmatpush3.bf16.msra.mxu0 %v793_v15  ;;  %v485_v23 = vadd.f32 %v1236_v45, %v453_v8  ;;  %v1530_v52 = vmax.f32 %v1197_v16, 0.0  ;;  %v1531_v53 = vmov 0.0|0.0   ;;  %v1532_v22 = vmax.f32 %v1199_v17, 0.0 }
  0x76   :  { %v390_v62 = vadd.f32 %v374_v47, %v1232_v44  ;;  %v235_v44 = vmul.f32 0.6931472, %v858_v18  ;;  %795 = vmatprep.subr.bf16.mxu0 %v1531_v53  ;;  %v486_v14 = vadd.f32 %v1241_v48, %v454_v30  ;;  %v244_v3 = vmul.f32 0.6931472, %v860_v26  ;;  %v864_v25 = vpop.eup %863 }
  0x77   :  { %v327_v40 = vadd.f32 %v223_v34, %v1530_v52  ;;  %v328_v21 = vadd.f32 %v232_v33, %v1532_v22  ;;  %v500_v45 = vmul.f32 0.5, %v484_v43  ;;  %v501_v1 = vmul.f32 0.5, %v485_v23 }
  0x78   :  { %v796_v39 = vpack.c.bf16 %v390_v62, %v389_v9  ;;  %v866_v5 = vpop.eup %865  ;;  %v241_v17 = vsel %vm1324_vm7, %v1310_v58, %v235_v44  ;;  %v250_v43 = vsel %vm1330_vm8, %v1320_v36, %v244_v3  ;;  %v502_v18 = vmul.f32 0.5, %v486_v14 }
  0x79   :  { %v375_v11 = vmul.f32 %v359_v49, %v327_v40  ;;  %873 = vlog2.f32 %v327_v40  ;;  %v455_v35 = vmul.f32 %v327_v40, %v327_v40  ;;  %v376_v16 = vmul.f32 %v360_v10, %v328_v21  ;;  %v868_v29 = vpop.eup %867 }
  0x7a   :  { %875 = vlog2.f32 %v328_v21  ;;  %v456_v0 = vmul.f32 %v328_v21, %v328_v21  ;;  %v404_v63 = vmul.f32 0.6931472, %v866_v5  ;;  %797 = vmatpush3.bf16.msra.mxu0 %v796_v39  ;;  %v406_v7 = vmul.f32 0.6931472, %v868_v29 }
  0x7b   :  { %v391_v48 = vadd.f32 %v375_v11, %v1244_v50  ;;  %v487_v20 = vadd.f32 %v1251_v55, %v455_v35  ;;  %798 = vmatprep.subr.bf16.mxu0 %v1531_v53  ;;  %v392_v59 = vadd.f32 %v376_v16, %v1246_v51  ;;  %v1533_v55 = vmax.f32 %v1204_v24, 0.0 }
  0x7c   :  { %v488_v46 = vadd.f32 %v1255_v56, %v456_v0  ;;  %v435_v50 = vsub.f32 0.0, %v404_v63  ;;  %v1534_v58 = vmax.f32 %v1209_v28, 0.0  ;;  %v870_v47 = vpop.eup %869  ;;  %v436_v26 = vsub.f32 0.0, %v406_v7 }
  0x7d   :  { %v329_v61 = vadd.f32 %v241_v17, %v1533_v55  ;;  %v503_v15 = vmul.f32 0.5, %v487_v20  ;;  %v799_v51 = vpack.c.bf16 %v392_v59, %v391_v48  ;;  %v253_v8 = vmul.f32 0.6931472, %v864_v25  ;;  %v347_v20 = vld [vmem:[#allocation5 + $0x40] sm:$0xff] }
  0x7e   :  { %v330_v2 = vadd.f32 %v250_v43, %v1534_v58  ;;  %v872_v56 = vpop.eup %871  ;;  %v515_v9 = vadd.f32 %v499_v31, %v435_v50  ;;  %v408_v62 = vmul.f32 0.6931472, %v870_v47  ;;  %v516_v30 = vadd.f32 %v500_v45, %v436_v26 }
  0x7f   :  { %v377_v27 = vmul.f32 %v361_v37, %v329_v61  ;;  %v410_v34 = vmul.f32 0.6931472, %v872_v56  ;;  %800 = vmatpush3.bf16.msra.mxu0 %v799_v51  ;;  %877 = vlog2.f32 %v329_v61  ;;  %v457_v49 = vmul.f32 %v329_v61, %v329_v61 }
  0x80   :  { %v378_v36 = vmul.f32 %v362_v54, %v330_v2  ;;  %v723_v24 = vadd.f32 -0.5, %v515_v9  ;;  %v437_v23 = vsub.f32 0.0, %v408_v62  ;;  %801 = vmatprep.subr.bf16.mxu0 %v1531_v53  ;;  %v724_v52 = vadd.f32 -0.5, %v516_v30 }
  0x81   :  { %v393_v28 = vadd.f32 %v377_v27, %v1259_v60  ;;  %v438_v40 = vsub.f32 0.0, %v410_v34  ;;  %879 = vlog2.f32 %v330_v2  ;;  %v458_v31 = vmul.f32 %v330_v2, %v330_v2  ;;  %v1393_v27 = vld [vmem:[#allocation7 + $0x60] sm:$0xff] }
  0x82   :  { %v394_v33 = vadd.f32 %v378_v36, %v1267_v12  ;;  %v517_v44 = vadd.f32 %v501_v1, %v437_v23  ;;  %v489_v14 = vadd.f32 %v1263_v4, %v457_v49  ;;  %v256_v22 = vmul.f32 %v1286_v32, %v1342_v57  ;;  %v363_v23 = vld [vmem:[#allocation8 + $0x40] sm:$0xff] }
  0x83   :  { %v874_v10 = vpop.eup %873  ;;  %v547_v3 = vadd.f32 %v724_v52, %v723_v24  ;;  %v518_v25 = vadd.f32 %v502_v18, %v438_v40  ;;  %v490_v60 = vadd.f32 %v1273_v19, %v458_v31  ;;  %v504_v35 = vmul.f32 0.5, %v488_v46  ;;  %v1400_v52 = vld [vmem:[#allocation7 + $0x70] sm:$0xff] }
  0x84   :  { %v802_v39 = vpack.c.bf16 %v394_v33, %v393_v28  ;;  %v876_v21 = vpop.eup %875  ;;  %v412_v45 = vmul.f32 0.6931472, %v874_v10  ;;  %v725_v11 = vadd.f32 -0.5, %v517_v44  ;;  %v257_v5 = vand.u32 2147483647, %v1286_v32 }
  0x85   :  { %v414_v12 = vmul.f32 0.6931472, %v876_v21  ;;  %v726_v16 = vadd.f32 -0.5, %v518_v25  ;;  %v260_v4 = vadd.f32 1.0, %v1349_v41  ;;  %v1535_v57 = vand.u32 2147483647, %v1265_v6 }
  0x86   :  { %803 = vmatpush3.bf16.msra.mxu0 %v802_v39  ;;  %v439_v1 = vsub.f32 0.0, %v412_v45  ;;  %v548_v29 = vadd.f32 %v725_v11, %v547_v3  ;;  %vm258_vm9 = vcmp.lt.f32.partialorder %v257_v5, 0.0004427343  ;;  %v263_v32 = vmul.f32 -0.5, %v1349_v41  ;;  %v1408_v25 = vld [vmem:[#allocation7 + $0x78] sm:$0xff] }
  0x87   :  { %804 = vmatprep.subr.bf16.mxu0 %v1531_v53  ;;  %v141_v0 = vsub.f32 0.0, %v1535_v57  ;;  %v440_v63 = vsub.f32 0.0, %v414_v12  ;;  %v259_v19 = vsel %vm258_vm9, %v256_v22, %v253_v8  ;;  %881 = vlog2.f32 %v260_v4 }
  0x88   :  { %v519_v48 = vadd.f32 %v503_v15, %v439_v1  ;;  %v549_v17 = vadd.f32 %v726_v16, %v548_v29  ;;  %v475_v59 = vmul.f32 %v347_v20, %v347_v20  ;;  %v1536_v37 = vmax.f32 %v1224_v38, 0.0  ;;  %v1395_v38 = vld [vmem:[#allocation7 + $0x68] sm:$0xff] }
  0x89   :  { %v520_v7 = vadd.f32 %v504_v35, %v440_v63  ;;  %v878_v46 = vpop.eup %877  ;;  %v1537_v50 = vand.u32 2147483647, %v1269_v13  ;;  %v167_v55 = vmul.f32 1.442695, %v141_v0  ;;  %v505_v2 = vmul.f32 0.5, %v489_v14  ;;  %v348_v16 = vld [vmem:[#allocation5 + $0x48] sm:$0xff] }
  0x8a   :  { %v727_v43 = vadd.f32 -0.5, %v519_v48  ;;  %v331_v54 = vadd.f32 %v259_v19, %v1536_v37  ;;  %v416_v58 = vmul.f32 0.6931472, %v878_v46  ;;  %v506_v47 = vmul.f32 0.5, %v490_v60  ;;  %v364_v1 = vld [vmem:[#allocation8 + $0x48] sm:$0xff] }
  0x8b   :  { %v142_v18 = vsub.f32 0.0, %v1537_v50  ;;  %v728_v61 = vadd.f32 -0.5, %v520_v7  ;;  %v880_v26 = vpop.eup %879  ;;  %v264_v62 = vadd.f32 1.0, %v263_v32  ;;  %v266_v30 = vand.u32 2147483647, %v1349_v41 }
  0x8c   :  { %v550_v15 = vadd.f32 %v727_v43, %v549_v17  ;;  %883 = vlog2.f32 %v331_v54  ;;  %v459_v51 = vmul.f32 %v331_v54, %v331_v54  ;;  %v418_v56 = vmul.f32 0.6931472, %v880_v26 }
  0x8d   :  { %v169_v8 = vmul.f32 1.442695, %v142_v18  ;;  %v441_v9 = vsub.f32 0.0, %v416_v58  ;;  %885 = vpow2.f32 %v167_v55  ;;  %v127_v28 = vand.u32 2147483647, %v1393_v27 }
  0x8e   :  { %v551_v36 = vadd.f32 %v728_v61, %v550_v15  ;;  %v491_v34 = vadd.f32 %v475_v59, %v459_v51  ;;  %v442_v49 = vsub.f32 0.0, %v418_v56  ;;  %v128_v33 = vand.u32 2147483647, %v1395_v38 }
  0x8f   :  { %887 = vpow2.f32 %v169_v8  ;;  %v521_v24 = vadd.f32 %v505_v2, %v441_v9  ;;  %v108_v10 = vmax.f32 %v1229_v42, 0.0  ;;  %v265_v44 = vmul.f32 %v1349_v41, %v264_v62 }
  0x90   :  { %v522_v40 = vadd.f32 %v506_v47, %v442_v49  ;;  %vm1404_vm10 = vcmp.lt.f32.partialorder %v266_v30, 0.0004427343  ;;  %v379_v22 = vmul.f32 %v363_v23, %v331_v54  ;;  %v143_v21 = vsub.f32 0.0, %v127_v28 }
  0x91   :  { %v729_v31 = vadd.f32 -0.5, %v521_v24  ;;  %v882_v14 = vpop.eup %881  ;;  %v144_v3 = vsub.f32 0.0, %v128_v33  ;;  %v129_v12 = vand.u32 2147483647, %v1400_v52  ;;  %v130_v4 = vand.u32 2147483647, %v1408_v25 }
  0x92   :  { %v730_v45 = vadd.f32 -0.5, %v522_v40  ;;  %v262_v11 = vmul.f32 0.6931472, %v882_v14  ;;  %v171_v35 = vmul.f32 1.442695, %v143_v21  ;;  %v476_v63 = vmul.f32 %v348_v16, %v348_v16  ;;  %v350_v21 = vld [vmem:[#allocation5 + $0x58] sm:$0xff] }
  0x93   :  { %v552_v60 = vadd.f32 %v729_v31, %v551_v36  ;;  %v173_v5 = vmul.f32 1.442695, %v144_v3  ;;  %v145_v57 = vsub.f32 0.0, %v129_v12  ;;  %v395_v19 = vadd.f32 %v379_v22, %v347_v20  ;;  %v367_v33 = vld [vmem:[#allocation8 + $0x60] sm:$0xff] }
  0x94   :  { %v268_v41 = vsel %vm1404_vm10, %v265_v44, %v262_v11  ;;  %889 = vpow2.f32 %v171_v35  ;;  %v507_v7 = vmul.f32 0.5, %v491_v34  ;;  %v146_v50 = vsub.f32 0.0, %v130_v4  ;;  %v365_v4 = vld [vmem:[#allocation8 + $0x50] sm:$0xff] }
  0x95   :  { %v553_v42 = vadd.f32 %v730_v45, %v552_v60  ;;  %v332_v29 = vadd.f32 %v268_v41, %v108_v10  ;;  %891 = vpow2.f32 %v173_v5  ;;  %v175_v18 = vmul.f32 1.442695, %v145_v57 }
  0x96   :  { %v884_v0 = vpop.eup %883  ;;  %v177_v15 = vmul.f32 1.442695, %v146_v50  ;;  %v109_v34 = vmax.f32 %v1265_v6, 0.0  ;;  %v110_v28 = vmax.f32 %v1269_v13, 0.0  ;;  %v349_v6 = vld [vmem:[#allocation5 + $0x50] sm:$0xff]  ;;  %v111_v57 = vmax.f32 %v1393_v27, 0.0 }
  0x97   :  { %v886_v48 = vpop.eup %885  ;;  %v420_v17 = vmul.f32 0.6931472, %v884_v0  ;;  %v380_v59 = vmul.f32 %v364_v1, %v332_v29  ;;  %893 = vlog2.f32 %v332_v29  ;;  %v460_v46 = vmul.f32 %v332_v29, %v332_v29 }
  0x98   :  { %v269_v43 = vadd.f32 1.0, %v886_v48  ;;  %v272_v2 = vmul.f32 -0.5, %v886_v48  ;;  %v275_v51 = vand.u32 2147483647, %v886_v48  ;;  %v477_v5 = vmul.f32 %v349_v6, %v349_v6 }
  0x99   :  { %v888_v32 = vpop.eup %887  ;;  %v443_v37 = vsub.f32 0.0, %v420_v17  ;;  %v396_v55 = vadd.f32 %v380_v59, %v348_v16  ;;  %v492_v61 = vadd.f32 %v476_v63, %v460_v46 }
  0x9a   :  { %v278_v54 = vadd.f32 1.0, %v888_v32  ;;  %895 = vlog2.f32 %v269_v43  ;;  %v281_v20 = vmul.f32 -0.5, %v888_v32  ;;  %v273_v56 = vadd.f32 1.0, %v272_v2 }
  0x9b   :  { %v523_v58 = vadd.f32 %v507_v7, %v443_v37  ;;  %v805_v47 = vpack.c.bf16 %v396_v55, %v395_v19  ;;  %v284_v36 = vand.u32 2147483647, %v888_v32  ;;  %v508_v23 = vmul.f32 0.5, %v492_v61 }
  0x9c   :  { %897 = vlog2.f32 %v278_v54  ;;  %v282_v62 = vadd.f32 1.0, %v281_v20  ;;  %vm1417_vm11 = vcmp.lt.f32.partialorder %v275_v51, 0.0004427343  ;;  %v274_v10 = vmul.f32 %v886_v48, %v273_v56  ;;  %v366_v48 = vld [vmem:[#allocation8 + $0x58] sm:$0xff] }
  0x9d   :  { %v731_v26 = vadd.f32 -0.5, %v523_v58  ;;  %899 = vpow2.f32 %v175_v18  ;;  %806 = vmatpush3.bf16.msra.mxu0 %v805_v47  ;;  %vm1421_vm12 = vcmp.lt.f32.partialorder %v284_v36, 0.0004427343 }
  0x9e   :  { %807 = vmatprep.subr.bf16.mxu0 %v1531_v53  ;;  %v890_v9 = vpop.eup %889  ;;  %901 = vpow2.f32 %v177_v15  ;;  %v283_v39 = vmul.f32 %v888_v32, %v282_v62  ;;  %v112_v62 = vmax.f32 %v1395_v38, 0.0  ;;  %v368_v38 = vld [vmem:[#allocation8 + $0x68] sm:$0xff] }
  0x9f   :  { %v554_v8 = vadd.f32 %v731_v26, %v553_v42  ;;  %v892_v30 = vpop.eup %891  ;;  %v287_v49 = vadd.f32 1.0, %v890_v9  ;;  %v290_v44 = vmul.f32 -0.5, %v890_v9  ;;  %v293_v3 = vand.u32 2147483647, %v890_v9 }
  0xa0   :  { %v296_v40 = vadd.f32 1.0, %v892_v30  ;;  %v299_v11 = vmul.f32 -0.5, %v892_v30  ;;  %v302_v12 = vand.u32 2147483647, %v892_v30  ;;  %v478_v42 = vmul.f32 %v350_v21, %v350_v21 }
  0xa1   :  { %v894_v24 = vpop.eup %893  ;;  %903 = vlog2.f32 %v287_v49  ;;  %v291_v0 = vadd.f32 1.0, %v290_v44  ;;  %vm1430_vm13 = vcmp.lt.f32.partialorder %v293_v3, 0.0004427343 }
  0xa2   :  { %v422_v31 = vmul.f32 0.6931472, %v894_v24  ;;  %905 = vlog2.f32 %v296_v40  ;;  %v300_v59 = vadd.f32 1.0, %v299_v11  ;;  %vm1434_vm14 = vcmp.lt.f32.partialorder %v302_v12, 0.0004427343 }
  0xa3   :  { %v292_v2 = vmul.f32 %v890_v9, %v291_v0  ;;  %v351_v9 = vld [vmem:[#allocation5 + $0x60] sm:$0xff] }
  0xa4   :  { %v896_v14 = vpop.eup %895  ;;  %v444_v45 = vsub.f32 0.0, %v422_v31  ;;  %v301_v15 = vmul.f32 %v892_v30, %v300_v59  ;;  %v114_v59 = vmax.f32 %v1408_v25, 0.0 }
  0xa5   :  { %v271_v60 = vmul.f32 0.6931472, %v896_v14 }
  0xa6   :  { %v898_v13 = vpop.eup %897  ;;  %v524_v16 = vadd.f32 %v508_v23, %v444_v45 }
  0xa7   :  { %v280_v35 = vmul.f32 0.6931472, %v898_v13  ;;  %v900_v41 = vpop.eup %899  ;;  %v277_v1 = vsel %vm1417_vm11, %v274_v10, %v271_v60  ;;  %v479_v10 = vmul.f32 %v351_v9, %v351_v9 }
  0xa8   :  { %v333_v63 = vadd.f32 %v277_v1, %v109_v34  ;;  %v305_v17 = vadd.f32 1.0, %v900_v41  ;;  %v732_v7 = vadd.f32 -0.5, %v524_v16  ;;  %v1438_v43 = vpop.eup %901  ;;  %v308_v54 = vmul.f32 -0.5, %v900_v41 }
  0xa9   :  { %v286_v29 = vsel %vm1421_vm12, %v283_v39, %v280_v35  ;;  %v314_v51 = vadd.f32 1.0, %v1438_v43  ;;  %v317_v40 = vmul.f32 -0.5, %v1438_v43  ;;  %v113_v39 = vmax.f32 %v1400_v52, 0.0 }
  0xaa   :  { %v334_v32 = vadd.f32 %v286_v29, %v110_v28  ;;  %v381_v27 = vmul.f32 %v365_v4, %v333_v63  ;;  %907 = vlog2.f32 %v333_v63  ;;  %v461_v37 = vmul.f32 %v333_v63, %v333_v63  ;;  %v352_v28 = vld [vmem:[#allocation5 + $0x68] sm:$0xff] }
  0xab   :  { %v1440_v50 = vadd.f32 %v732_v7, %v554_v8  ;;  %v904_v47 = vpop.eup %903  ;;  %v309_v34 = vadd.f32 1.0, %v308_v54  ;;  %v311_v8 = vand.u32 2147483647, %v900_v41  ;;  %v480_v44 = vmul.f32 %v352_v28, %v352_v28 }
  0xac   :  { %v382_v18 = vmul.f32 %v366_v48, %v334_v32  ;;  %909 = vlog2.f32 %v334_v32  ;;  %v462_v55 = vmul.f32 %v334_v32, %v334_v32  ;;  %v397_v61 = vadd.f32 %v381_v27, %v349_v6  ;;  %v906_v56 = vpop.eup %905  ;;  %v604_v6 = vld [vmem:[#allocation2] sm:$0xff] }
  0xad   :  { %v493_v58 = vadd.f32 %v477_v5, %v461_v37  ;;  %911 = vlog2.f32 %v305_v17  ;;  %v289_v36 = vmul.f32 0.6931472, %v904_v47  ;;  %v298_v24 = vmul.f32 0.6931472, %v906_v56  ;;  %v369_v37 = vld [vmem:[#allocation8 + $0x70] sm:$0xff]  ;;  %v370_v47 = vld [vmem:[#allocation8 + $0x78] sm:$0xff] }
  0xae   :  { %v398_v20 = vadd.f32 %v382_v18, %v350_v21  ;;  %v494_v26 = vadd.f32 %v478_v42, %v462_v55  ;;  %913 = vlog2.f32 %v314_v51  ;;  %v310_v22 = vmul.f32 %v900_v41, %v309_v34  ;;  %v354_v56 = vld [vmem:[#allocation5 + $0x78] sm:$0xff] }
  0xaf   :  { %v295_v23 = vsel %vm1430_vm13, %v292_v2, %v289_v36  ;;  %v304_v30 = vsel %vm1434_vm14, %v301_v15, %v298_v24  ;;  %vm1451_vm15 = vcmp.lt.f32.partialorder %v311_v8, 0.0004427343  ;;  %v509_v21 = vmul.f32 0.5, %v493_v58 }
  0xb0   :  { %v808_v49 = vpack.c.bf16 %v398_v20, %v397_v61  ;;  %v335_v31 = vadd.f32 %v295_v23, %v111_v57  ;;  %v336_v14 = vadd.f32 %v304_v30, %v112_v62  ;;  %v318_v12 = vadd.f32 1.0, %v317_v40  ;;  %v353_v61 = vld [vmem:[#allocation5 + $0x70] sm:$0xff] }
  0xb1   :  { %v320_v52 = vand.u32 2147483647, %v1438_v43  ;;  %v510_v4 = vmul.f32 0.5, %v494_v26  ;;  %v482_v24 = vmul.f32 %v354_v56, %v354_v56 }
  0xb2   :  { %809 = vmatpush3.bf16.msra.mxu0 %v808_v49  ;;  %v383_v3 = vmul.f32 %v367_v33, %v335_v31  ;;  %915 = vlog2.f32 %v335_v31  ;;  %v463_v13 = vmul.f32 %v335_v31, %v335_v31  ;;  %v384_v60 = vmul.f32 %v368_v38, %v336_v14 }
  0xb3   :  { %810 = vmatprep.subr.bf16.mxu0 %v1531_v53  ;;  %917 = vlog2.f32 %v336_v14  ;;  %v464_v11 = vmul.f32 %v336_v14, %v336_v14  ;;  %v319_v17 = vmul.f32 %v1438_v43, %v318_v12  ;;  %vm1460_vm0 = vcmp.lt.f32.partialorder %v320_v52, 0.0004427343 }
  0xb4   :  { %v908_v45 = vpop.eup %907  ;;  %v399_v42 = vadd.f32 %v383_v3, %v351_v9  ;;  %v495_v16 = vadd.f32 %v479_v10, %v463_v13  ;;  %v400_v57 = vadd.f32 %v384_v60, %v352_v28  ;;  %v481_v43 = vmul.f32 %v353_v61, %v353_v61 }
  0xb5   :  { %v424_v5 = vmul.f32 0.6931472, %v908_v45  ;;  %v496_v0 = vadd.f32 %v480_v44, %v464_v11 }
  0xb6   :  { %v910_v35 = vpop.eup %909  ;;  %v811_v19 = vpack.c.bf16 %v400_v57, %v399_v42  ;;  %v511_v8 = vmul.f32 0.5, %v495_v16  ;;  %v568_v42 = vld [vmem:[%s1506_s5] sm:$0x1] }
  0xb7   :  { %v912_v41 = vpop.eup %911  ;;  %v426_v1 = vmul.f32 0.6931472, %v910_v35  ;;  %v445_v29 = vsub.f32 0.0, %v424_v5  ;;  %v512_v49 = vmul.f32 0.5, %v496_v0  ;;  %v570_v16 = vand.u32 2147483647, %v568_v42 }
  0xb8   :  { %v307_v63 = vmul.f32 0.6931472, %v912_v41  ;;  %v914_v7 = vpop.eup %913  ;;  %812 = vmatpush3.bf16.msra.mxu0 %v811_v19 }
  0xb9   :  { %v446_v48 = vsub.f32 0.0, %v426_v1  ;;  %v525_v32 = vadd.f32 %v509_v21, %v445_v29  ;;  %v316_v18 = vmul.f32 0.6931472, %v914_v7  ;;  %813 = vmatprep.subr.bf16.mxu0 %v1531_v53  ;;  %v571_v52 = vsub.f32 0.0, %v570_v16 }
  0xba   :  { %v313_v46 = vsel %vm1451_vm15, %v310_v22, %v307_v63  ;;  %v569_v7 = vmax.f32 %v568_v42, 0.0 }
  0xbb   :  { %v526_v54 = vadd.f32 %v510_v4, %v446_v48  ;;  %v337_v55 = vadd.f32 %v313_v46, %v113_v39  ;;  %v733_v58 = vadd.f32 -0.5, %v525_v32  ;;  %v322_v25 = vsel %vm1460_vm0, %v319_v17, %v316_v18  ;;  %v584_v18 = vld [vmem:[%s1505_s4] sm:$0x1]  ;;  %s1080_s4 = smov [#allocation11]  }
  0xbc   :  { %v916_v26 = vpop.eup %915  ;;  %v338_v51 = vadd.f32 %v322_v25, %v114_v59  ;;  %v572_v41 = vmul.f32 1.442695, %v571_v52  ;;  %s708_s11 = sshll.u32 %s1080_s4, 4  ;;  %s709_s11 = int_to_ptr.vmem [resolvable:$true] %s708_s11 }
  0xbd   :  { %v734_v2 = vadd.f32 -0.5, %v526_v54  ;;  %v385_v20 = vmul.f32 %v369_v37, %v337_v55  ;;  %919 = vlog2.f32 %v337_v55  ;;  %v556_v15 = vadd.f32 %v733_v58, %v1440_v50  ;;  %v918_v36 = vpop.eup %917  ;;  %s1017_s12 = scalar_lea.vmem %s709_s11, 16  ;;  %s1021_s13 = scalar_lea.vmem %s709_s11, 32 }
  0xbe   :  { %v465_v62 = vmul.f32 %v337_v55, %v337_v55  ;;  %v428_v34 = vmul.f32 0.6931472, %v916_v26  ;;  %v430_v23 = vmul.f32 0.6931472, %v918_v36  ;;  %v386_v9 = vmul.f32 %v370_v47, %v338_v51  ;;  %p1018_p4 = scmp.ne.s32.totalorder %s709_s11, %s1017_s12  ;;  %p1022_p5 = scmp.lt.s32.totalorder %s709_s11, %s709_s11 }
  0xbf   :  { %v557_v53 = vadd.f32 %v734_v2, %v556_v15  ;;  %v401_v28 = vadd.f32 %v385_v20, %v353_v61  ;;  %v466_v40 = vmul.f32 %v338_v51, %v338_v51  ;;  %921 = vpow2.f32 %v572_v41  ;;  %p1023_p6 = scmp.lt.s32.totalorder %s1021_s13, %s1017_s12 }
  0xc0   :  { %v447_v33 = vsub.f32 0.0, %v428_v34  ;;  %v497_v30 = vadd.f32 %v481_v43, %v465_v62  ;;  %v448_v31 = vsub.f32 0.0, %v430_v23  ;;  %v402_v38 = vadd.f32 %v386_v9, %v354_v56  ;;  %v680_v34 = vld [vmem:[%s1507_s6] sm:$0x1] }
  0xc1   :  { %v498_v44 = vadd.f32 %v482_v24, %v466_v40  ;;  %923 = vlog2.f32 %v338_v51  ;;  %v594_v58 = vmul.f32 %v584_v18, %v584_v18  ;;  %p1024_p7 = por %p1023_p6, %p1022_p5 }
  0xc2   :  { %v527_v10 = vadd.f32 %v511_v8, %v447_v33  ;;  %v528_v50 = vadd.f32 %v512_v49, %v448_v31  ;;  %v814_v14 = vpack.c.bf16 %v402_v38, %v401_v28  ;;  %v513_v45 = vmul.f32 0.5, %v497_v30 }
  0xc3   :  { %v514_v37 = vmul.f32 0.5, %v498_v44  ;;  %p1025_p8 = pnand %p1024_p7, %p1018_p4 }
  0xc4   :  { %v735_v39 = vadd.f32 -0.5, %v527_v10  ;;  %v736_v22 = vadd.f32 -0.5, %v528_v50  ;;  %815 = vmatpush3.bf16.msra.mxu0 %v814_v14 }
  0xc6   :  { %v558_v3 = vadd.f32 %v735_v39, %v557_v53 }
  0xc7   :  { %v920_v21 = vpop.eup %919  ;;  %790 = vmatmul.mubr.f32.vlgmr.msra.gmra.mrb[0].mxu0 %v604_v6 }
  0xc8   :  { %v432_v13 = vmul.f32 0.6931472, %v920_v21  ;;  %v559_v60 = vadd.f32 %v736_v22, %v558_v3 }
  0xc9   :  { %v922_v1 = vpop.eup %921 }
  0xca   :  { %v449_v11 = vsub.f32 0.0, %v432_v13  ;;  %v574_v4 = vadd.f32 1.0, %v922_v1  ;;  %v577_v57 = vmul.f32 -0.5, %v922_v1  ;;  %v580_v48 = vand.u32 2147483647, %v922_v1 }
  0xcb   :  { %v924_v0 = vpop.eup %923 }
  0xcc   :  { %v529_v12 = vadd.f32 %v513_v45, %v449_v11  ;;  %925 = vlog2.f32 %v574_v4  ;;  %v578_v29 = vadd.f32 1.0, %v577_v57  ;;  %vm581_vm1 = vcmp.lt.f32.partialorder %v580_v48, 0.0004427343 }
  0xcd   :  { %v434_v32 = vmul.f32 0.6931472, %v924_v0 }
  0xce   :  { %v737_v35 = vadd.f32 -0.5, %v529_v12  ;;  %v579_v17 = vmul.f32 %v922_v1, %v578_v29 }
  0xcf   :  { %v450_v27 = vsub.f32 0.0, %v434_v32 }
  0xd0   :  { %v560_v5 = vadd.f32 %v737_v35, %v559_v60 }
  0xd1   :  { %v530_v54 = vadd.f32 %v514_v37, %v450_v27 }
  0xd3   :  { %v738_v55 = vadd.f32 -0.5, %v530_v54 }
  0xd5   :  { %v561_v47 = vadd.f32 %v738_v55, %v560_v5 }
  0xd6   :  { %v926_v63 = vpop.eup %925 }
  0xd7   :  { %v576_v19 = vmul.f32 0.6931472, %v926_v63  ;;  %v562_v15 = vrot.slane %v561_v47, 4 }
  0xd9   :  { %v582_v59 = vsel %vm581_vm1, %v579_v17, %v576_v19  ;;  %v563_v56 = vadd.f32 %v562_v15, %v561_v47 }
  0xda   :  { %v583_v46 = vadd.f32 %v582_v59, %v569_v7 }
  0xdb   :  { %v564_v36 = vrot.slane %v563_v56, 2 }
  0xdc   :  { %927 = vlog2.f32 %v583_v46  ;;  %v593_v61 = vmul.f32 %v583_v46, %v583_v46  ;;  %v681_v8 = vmul.f32 %v680_v34, %v583_v46 }
  0xdd   :  { %v565_v49 = vadd.f32 %v564_v36, %v563_v56 }
  0xde   :  { %v595_v25 = vadd.f32 %v594_v58, %v593_v61  ;;  %v682_v24 = vadd.f32 %v681_v8, %v584_v18 }
  0xdf   :  { %v566_v53 = vrot.slane %v565_v49, 1 }
  0xe0   :  { %v596_v26 = vmul.f32 0.5, %v595_v25 }
  0xe1   :  { %v567_v23 = vadd.f32 %v566_v53, %v565_v49 }
  0xe6   :  { %v928_v43 = vpop.eup %927 }
  0xe7   :  { %v591_v2 = vmul.f32 0.6931472, %v928_v43 }
  0xe9   :  { %v592_v20 = vsub.f32 0.0, %v591_v2 }
  0xeb   :  { %v597_v51 = vadd.f32 %v596_v26, %v592_v20 }
  0xed   :  { %v739_v62 = vadd.f32 -0.5, %v597_v51 }
  0xef   :  { %599 = vst [vmem:[#allocation11] sm:$0x1] %v739_v62 }
  0xf6   :  { %v600_v9 = vld [vmem:[#allocation11] sm:$0x1] }
  0xf7   :  { %v601_v28 = vadd.f32 %v600_v9, %v567_v23 }
  0xf9   :  { %602 = vst [vmem:[#allocation11] sm:$0x1] %v601_v28 }
  0xfa   :  { %1028 = shalt.err (!%p1025_p8)
}
  0xfb   :  { %s1029_s17 = scalar_lea.hbm %s1509_s8, 16 }
  0xfc   :  { %p1030_p9 = scmp.ne.s32.totalorder %s1509_s8, %s1029_s17  ;;  %p1033_p10 = scmp.lt.u32.totalorder %s1029_s17, %s1509_s8 }
  0xfe   :  { %p1035_p11 = pnand %p1033_p10, %p1030_p9 }
 0x100   :  { %1038 = shalt.err (!%p1035_p11)
}
 0x101   :  { %711 = dma.vmem_to_hbm [thread:$0]  %s709_s11, 16, %s1509_s8, [#allocation12]   ;;  %v685_v33 = vlaneseq }
 0x102   :  { %s1081_s24 = smov [#allocation10]  }
 0x103   :  { %v686_v40 = vshrl.u32 %v685_v33, 7  ;;  %s698_s25 = sshll.u32 %s1081_s24, 4  ;;  %s699_s25 = int_to_ptr.vmem [resolvable:$true] %s698_s25 }
 0x104   :  { %s1039_s26 = scalar_lea.vmem %s699_s25, 128  ;;  %p1044_p13 = scmp.lt.s32.totalorder %s699_s25, %s699_s25 }
 0x105   :  { %v687_v30 = vsub.s32 0, %v686_v40  ;;  %p1040_p12 = scmp.ne.s32.totalorder %s699_s25, %s1039_s26  ;;  %p1045_p0 = scmp.lt.s32.totalorder %s1039_s26, %s1039_s26 }
 0x107   :  { %v688_v31 = vrot.slane %v682_v24, %v687_v30  ;;  %p1046_p1 = por %p1045_p0, %p1044_p13 }
 0x109   :  { %p1047_p2 = pnand %p1046_p1, %p1040_p12 }
 0x19a   :  { %v671_v38 = vpop.f32.mrb[0].mxu0 }
 0x19b   :  { %v791_v10 = vpop.f32.mrb[1].mxu0  ;;  %v690_v44 = vadd.f32 %v688_v31, %v671_v38 }
 0x19d   :  { %691 = vst [vmem:[#allocation10] sm:$0xff] %v690_v44 }
 0x19e   :  { %1050 = shalt.err (!%p1047_p2)
}
 0x19f   :  { %s1051_s29 = scalar_lea.hbm %s1508_s7, 128 }
 0x1a0   :  { %p1052_p3 = scmp.ne.s32.totalorder %s1508_s7, %s1051_s29  ;;  %p1055_p4 = scmp.lt.u32.totalorder %s1051_s29, %s1508_s7 }
 0x1a2   :  { %p1057_p5 = pnand %p1055_p4, %p1052_p3 }
 0x1a4   :  { %1060 = shalt.err (!%p1057_p5)
}
 0x1a5   :  { %701 = dma.vmem_to_hbm [thread:$0]  %s699_s25, 128, %s1508_s7, [#allocation4]  }
 0x1a6   :  { %1067 = dma.done.wait [#allocation4], 128  }
 0x1a7   :  { %1068 = vsyncadd [#allocation4], 4294967168 }
 0x1a8   :  { %1069 = dma.done.wait [#allocation12], 16  }
 0x1a9   :  { %1070 = vsyncadd [#allocation12], 4294967280 }
 0x1aa   :  { %718 = vsyncpa [#allocation3], 1 }
 0x1ab   :  { %719 = vsyncpa [#allocation6], 1 }
 0x1ac   :  { %720 = vsyncpa [#allocation9], 1 }
 0x1ad   :  { %721 = vsyncpa [#allocation4], 1 }
 0x1ae   :  { %722 = vsyncpa [#allocation12], 1 }

</bundles_post_ra>
